<compile_context>
chip_gen: v7x
topology: tpu7x:2x2x1
jax: 0.10.0
libtpu: 0.0.40
codegen_flags: <defaults>
</compile_context>

<pallas_src>
import jax
import jax.numpy as jnp
from jax.experimental import pallas as pl
from jax.experimental.pallas import tpu as pltpu


def _round_up(n, m):
    return ((n + m - 1) // m) * m


def kcal_net_kernel(x_ref,
                    w1_ref, b1_ref,
                    w2_ref, b2_ref,
                    w3_ref, b3_ref,
                    w4_ref, b4_ref,
                    w5_ref, b5_ref,
                    out_ref):
    # Batch-on-lanes layout: h is (features, TILE_B).  Weights are [out, in]
    # (the native torch layout), so every layer is a plain matmul
    # W[out,in] @ h[in,TILE_B] -> (out, TILE_B).  bf16 operands, f32 accumulate.
    h = x_ref[...].astype(jnp.bfloat16)                        # (45, TILE_B)

    # fc1 + ReLU
    h = jnp.dot(w1_ref[...], h, preferred_element_type=jnp.float32) + b1_ref[...]
    h = jnp.maximum(h, 0.0).astype(jnp.bfloat16)               # (90, TILE_B)
    # fc2 + ReLU
    h = jnp.dot(w2_ref[...], h, preferred_element_type=jnp.float32) + b2_ref[...]
    h = jnp.maximum(h, 0.0).astype(jnp.bfloat16)               # (60, TILE_B)
    # fc3 + ReLU
    h = jnp.dot(w3_ref[...], h, preferred_element_type=jnp.float32) + b3_ref[...]
    h = jnp.maximum(h, 0.0).astype(jnp.bfloat16)               # (30, TILE_B)
    # fc4 + ReLU
    h = jnp.dot(w4_ref[...], h, preferred_element_type=jnp.float32) + b4_ref[...]
    h = jnp.maximum(h, 0.0).astype(jnp.bfloat16)               # (30, TILE_B)

    # fc5: plain (1, 30) @ (30, TILE_B) -> lane-dense (1, TILE_B) row; no
    # transposed-operand handling, no vxpose of the activation.
    y = jnp.dot(w5_ref[...], h, preferred_element_type=jnp.float32) + b5_ref[...]

    out_ref[...] = y.astype(out_ref.dtype)                     # (1, TILE_B)


def kcal_net_forward(x, params, *, tile_b_max=4096, prefer_two_tiles=True):
    """x: [B, 45]. params: [(W[in,out], b[1,out]) x 5] (fc5 bias is (1,1))."""
    B, F = x.shape
    assert F == 45, F

    # --- Tiling math (balanced, lane-dense, v7x-friendly) ---
    # 1) how many tiles do we need at the max tile width?
    num_tiles = max(pl.cdiv(B, tile_b_max), 1)
    # 2) give the second TensorCore (v7x) work when the batch is big enough.
    if prefer_two_tiles and B > 512:
        num_tiles = max(num_tiles, 2)
    # 3) balance the per-tile width and round to a lane-dense multiple of 256.
    tb = _round_up(pl.cdiv(B, num_tiles), 256)
    b_pad = num_tiles * tb

    # Present x as (45, B) — batch on the lane axis — and pad the batch.
    x_t = x.T                                                  # (45, B)
    if b_pad != B:
        x_t = jnp.pad(x_t, ((0, 0), (0, b_pad - B)))

    (w1, b1), (w2, b2), (w3, b3), (w4, b4), (w5, b5) = params
    flat_params = []
    for w, b in ((w1, b1), (w2, b2), (w3, b3), (w4, b4), (w5, b5)):
        flat_params.append(w.T.astype(jnp.bfloat16))   # (out, in)  bf16 MXU operand
        flat_params.append(b.T.astype(jnp.float32))    # (out, 1)   f32 bias (lane-broadcast)

    # Parameters: full-shape blocks with a constant index_map -> DMA'd once,
    # VMEM-resident across the whole grid.
    param_specs = [pl.BlockSpec(p.shape, lambda i: (0, 0)) for p in flat_params]

    # Cost estimate: 2 * cols * (45*90 + 90*60 + 60*30 + 30*30 + 30*1) flops.
    flops = 2 * b_pad * 12180
    bytes_accessed = int(
        x_t.size * x_t.dtype.itemsize
        + b_pad * 4
        + sum(p.size * p.dtype.itemsize for p in flat_params))

    out_row = pl.pallas_call(
        kcal_net_kernel,
        out_shape=jax.ShapeDtypeStruct((1, b_pad), jnp.float32),
        grid=(num_tiles,),
        in_specs=[pl.BlockSpec((45, tb), lambda i: (0, i))] + param_specs,
        out_specs=pl.BlockSpec((1, tb), lambda i: (0, i)),
        compiler_params=pltpu.CompilerParams(
            dimension_semantics=("parallel",),
            vmem_limit_bytes=32 * 1024 * 1024),
        cost_estimate=pl.CostEstimate(
            flops=flops, transcendentals=0, bytes_accessed=bytes_accessed),
    )(x_t, *flat_params)

    # (1, b_pad) lane-dense row -> (B, 1) column.
    return out_row.reshape(b_pad, 1)[:B]


def init_params(key):
    """Deterministic init mimicking torch.nn.Linear default U[-1/sqrt(fan_in), +]."""
    dims = [(45, 90), (90, 60), (60, 30), (30, 30), (30, 1)]
    params = []
    for fan_in, fan_out in dims:
        key, kw, kb = jax.random.split(key, 3)
        bound = 1.0 / jnp.sqrt(jnp.float32(fan_in))
        # stored as [in, out] (transpose of torch's [out, in]) for x @ W
        w = jax.random.uniform(kw, (fan_in, fan_out), jnp.float32, -bound, bound)
        b = jax.random.uniform(kb, (1, fan_out), jnp.float32, -bound, bound)
        params.append((w, b))
    return params


def reference_forward(x, params):
    """Pure f32 reference (matches the PyTorch module numerics)."""
    h = x
    for i, (w, b) in enumerate(params):
        h = h @ w + b
        if i < len(params) - 1:
            h = jnp.maximum(h, 0.0)
    return h


def reference_forward_bf16(x, params):
    """Reference with the same bf16-operand / f32-accumulation scheme as the kernel."""
    h = x.astype(jnp.bfloat16)
    for i, (w, b) in enumerate(params):
        h = jnp.dot(h, w.astype(jnp.bfloat16),
                    preferred_element_type=jnp.float32) + b.astype(jnp.float32)
        if i < len(params) - 1:
            h = jnp.maximum(h, 0.0).astype(jnp.bfloat16)
    return h


if __name__ == "__main__":
    key = jax.random.PRNGKey(0)
    key_x, key_p, key_x2 = jax.random.split(key, 3)

    params = init_params(key_p)

    # Small demo shape: single 256-wide tile, lane-dense output.
    batch = 8
    x = jax.random.normal(key_x, (batch, 45), dtype=jnp.float32)
    out = jax.block_until_ready(kcal_net_forward(x, params))
    ref_bf16 = reference_forward_bf16(x, params)
    ref_f32 = reference_forward(x, params)
    assert out.shape == (batch, 1), out.shape
    assert jnp.allclose(out, ref_bf16, atol=1e-3, rtol=1e-3), "mismatch vs bf16 reference"
    assert jnp.allclose(out, ref_f32, atol=5e-2, rtol=5e-2), "mismatch vs f32 reference"

    # Larger batch: exercises the multi-tile grid (>=2 tiles for v7x), the
    # balanced 256-aligned tiling, padding, and the lane-dense output blocks.
    batch2 = 1000
    x2 = jax.random.normal(key_x2, (batch2, 45), dtype=jnp.float32)
    out2 = jax.block_until_ready(kcal_net_forward(x2, params))
    ref2 = reference_forward_bf16(x2, params)
    assert out2.shape == (batch2, 1), out2.shape
    assert jnp.allclose(out2, ref2, atol=1e-3, rtol=1e-3), "mismatch vs bf16 reference (B=1000)"

    print("KERNEL_OK")
</pallas_src>

<mosaic_0001>
module attributes {stable_mosaic.version = 11 : i64} {
  func.func @kcal_net_kernel(%arg0: i32, %arg1: memref<45x256xf32, #tpu.memory_space<vmem>>, %arg2: memref<90x45xbf16, #tpu.memory_space<vmem>>, %arg3: memref<90x1xf32, #tpu.memory_space<vmem>>, %arg4: memref<60x90xbf16, #tpu.memory_space<vmem>>, %arg5: memref<60x1xf32, #tpu.memory_space<vmem>>, %arg6: memref<30x60xbf16, #tpu.memory_space<vmem>>, %arg7: memref<30x1xf32, #tpu.memory_space<vmem>>, %arg8: memref<30x30xbf16, #tpu.memory_space<vmem>>, %arg9: memref<30x1xf32, #tpu.memory_space<vmem>>, %arg10: memref<1x30xbf16, #tpu.memory_space<vmem>>, %arg11: memref<1x1xf32, #tpu.memory_space<vmem>>, %arg12: memref<1x256xf32, #tpu.memory_space<vmem>>) attributes {dimension_semantics = [#tpu.dimension_semantics<parallel>], iteration_bounds = array<i64: 1>, scalar_prefetch = 0 : i64, scratch_operands = 0 : i64, tpu.core_type = #tpu.core_type<tc>, window_params = [{transform_indices = @transform_0, window_bounds = array<i64: 45, 256>}, {pipeline_mode = #tpu.pipeline_mode<synchronous>, transform_indices = @transform_1, window_bounds = array<i64: 90, 45>}, {pipeline_mode = #tpu.pipeline_mode<synchronous>, transform_indices = @transform_2, window_bounds = array<i64: 90, 1>}, {pipeline_mode = #tpu.pipeline_mode<synchronous>, transform_indices = @transform_3, window_bounds = array<i64: 60, 90>}, {pipeline_mode = #tpu.pipeline_mode<synchronous>, transform_indices = @transform_4, window_bounds = array<i64: 60, 1>}, {pipeline_mode = #tpu.pipeline_mode<synchronous>, transform_indices = @transform_5, window_bounds = array<i64: 30, 60>}, {pipeline_mode = #tpu.pipeline_mode<synchronous>, transform_indices = @transform_6, window_bounds = array<i64: 30, 1>}, {pipeline_mode = #tpu.pipeline_mode<synchronous>, transform_indices = @transform_7, window_bounds = array<i64: 30, 30>}, {pipeline_mode = #tpu.pipeline_mode<synchronous>, transform_indices = @transform_8, window_bounds = array<i64: 30, 1>}, {pipeline_mode = #tpu.pipeline_mode<synchronous>, transform_indices = @transform_9, window_bounds = array<i64: 1, 30>}, {pipeline_mode = #tpu.pipeline_mode<synchronous>, transform_indices = @transform_10, window_bounds = array<i64: 1, 1>}, {transform_indices = @transform_11, window_bounds = array<i64: 1, 256>}]} {
    %c0 = arith.constant 0 : index
    %c0_0 = arith.constant 0 : index
    %0 = vector.load %arg1[%c0, %c0_0] : memref<45x256xf32, #tpu.memory_space<vmem>>, vector<45x256xf32>
    %1 = arith.truncf %0 : vector<45x256xf32> to vector<45x256xbf16>
    %c0_1 = arith.constant 0 : index
    %c0_2 = arith.constant 0 : index
    %2 = vector.load %arg2[%c0_1, %c0_2] : memref<90x45xbf16, #tpu.memory_space<vmem>>, vector<90x45xbf16>
    %cst = arith.constant dense<0.000000e+00> : vector<90x256xf32>
    %3 = tpu.matmul %2, %1, %cst {dimension_numbers = #tpu.dot_dimension_numbers<[1], [0], [0], [1], [0, 0, 1, 1], [], []>} : vector<90x45xbf16>, vector<45x256xbf16>, vector<90x256xf32> -> vector<90x256xf32>
    %c0_3 = arith.constant 0 : index
    %c0_4 = arith.constant 0 : index
    %4 = vector.load %arg3[%c0_3, %c0_4] : memref<90x1xf32, #tpu.memory_space<vmem>>, vector<90x1xf32>
    %5 = vector.broadcast %4 : vector<90x1xf32> to vector<90x256xf32>
    %6 = arith.addf %3, %5 : vector<90x256xf32>
    %cst_5 = arith.constant 0.000000e+00 : f32
    %7 = vector.broadcast %cst_5 : f32 to vector<90x256xf32>
    %8 = arith.maximumf %6, %7 : vector<90x256xf32>
    %9 = arith.truncf %8 : vector<90x256xf32> to vector<90x256xbf16>
    %c0_6 = arith.constant 0 : index
    %c0_7 = arith.constant 0 : index
    %10 = vector.load %arg4[%c0_6, %c0_7] : memref<60x90xbf16, #tpu.memory_space<vmem>>, vector<60x90xbf16>
    %cst_8 = arith.constant dense<0.000000e+00> : vector<60x256xf32>
    %11 = tpu.matmul %10, %9, %cst_8 {dimension_numbers = #tpu.dot_dimension_numbers<[1], [0], [0], [1], [0, 0, 1, 1], [], []>} : vector<60x90xbf16>, vector<90x256xbf16>, vector<60x256xf32> -> vector<60x256xf32>
    %c0_9 = arith.constant 0 : index
    %c0_10 = arith.constant 0 : index
    %12 = vector.load %arg5[%c0_9, %c0_10] : memref<60x1xf32, #tpu.memory_space<vmem>>, vector<60x1xf32>
    %13 = vector.broadcast %12 : vector<60x1xf32> to vector<60x256xf32>
    %14 = arith.addf %11, %13 : vector<60x256xf32>
    %cst_11 = arith.constant 0.000000e+00 : f32
    %15 = vector.broadcast %cst_11 : f32 to vector<60x256xf32>
    %16 = arith.maximumf %14, %15 : vector<60x256xf32>
    %17 = arith.truncf %16 : vector<60x256xf32> to vector<60x256xbf16>
    %c0_12 = arith.constant 0 : index
    %c0_13 = arith.constant 0 : index
    %18 = vector.load %arg6[%c0_12, %c0_13] : memref<30x60xbf16, #tpu.memory_space<vmem>>, vector<30x60xbf16>
    %cst_14 = arith.constant dense<0.000000e+00> : vector<30x256xf32>
    %19 = tpu.matmul %18, %17, %cst_14 {dimension_numbers = #tpu.dot_dimension_numbers<[1], [0], [0], [1], [0, 0, 1, 1], [], []>} : vector<30x60xbf16>, vector<60x256xbf16>, vector<30x256xf32> -> vector<30x256xf32>
    %c0_15 = arith.constant 0 : index
    %c0_16 = arith.constant 0 : index
    %20 = vector.load %arg7[%c0_15, %c0_16] : memref<30x1xf32, #tpu.memory_space<vmem>>, vector<30x1xf32>
    %21 = vector.broadcast %20 : vector<30x1xf32> to vector<30x256xf32>
    %22 = arith.addf %19, %21 : vector<30x256xf32>
    %cst_17 = arith.constant 0.000000e+00 : f32
    %23 = vector.broadcast %cst_17 : f32 to vector<30x256xf32>
    %24 = arith.maximumf %22, %23 : vector<30x256xf32>
    %25 = arith.truncf %24 : vector<30x256xf32> to vector<30x256xbf16>
    %c0_18 = arith.constant 0 : index
    %c0_19 = arith.constant 0 : index
    %26 = vector.load %arg8[%c0_18, %c0_19] : memref<30x30xbf16, #tpu.memory_space<vmem>>, vector<30x30xbf16>
    %cst_20 = arith.constant dense<0.000000e+00> : vector<30x256xf32>
    %27 = tpu.matmul %26, %25, %cst_20 {dimension_numbers = #tpu.dot_dimension_numbers<[1], [0], [0], [1], [0, 0, 1, 1], [], []>} : vector<30x30xbf16>, vector<30x256xbf16>, vector<30x256xf32> -> vector<30x256xf32>
    %c0_21 = arith.constant 0 : index
    %c0_22 = arith.constant 0 : index
    %28 = vector.load %arg9[%c0_21, %c0_22] : memref<30x1xf32, #tpu.memory_space<vmem>>, vector<30x1xf32>
    %29 = vector.broadcast %28 : vector<30x1xf32> to vector<30x256xf32>
    %30 = arith.addf %27, %29 : vector<30x256xf32>
    %cst_23 = arith.constant 0.000000e+00 : f32
    %31 = vector.broadcast %cst_23 : f32 to vector<30x256xf32>
    %32 = arith.maximumf %30, %31 : vector<30x256xf32>
    %33 = arith.truncf %32 : vector<30x256xf32> to vector<30x256xbf16>
    %c0_24 = arith.constant 0 : index
    %c0_25 = arith.constant 0 : index
    %34 = vector.load %arg10[%c0_24, %c0_25] : memref<1x30xbf16, #tpu.memory_space<vmem>>, vector<1x30xbf16>
    %cst_26 = arith.constant dense<0.000000e+00> : vector<1x256xf32>
    %35 = tpu.matmul %34, %33, %cst_26 {dimension_numbers = #tpu.dot_dimension_numbers<[1], [0], [0], [1], [0, 0, 1, 1], [], []>} : vector<1x30xbf16>, vector<30x256xbf16>, vector<1x256xf32> -> vector<1x256xf32>
    %c0_27 = arith.constant 0 : index
    %c0_28 = arith.constant 0 : index
    %36 = vector.load %arg11[%c0_27, %c0_28] : memref<1x1xf32, #tpu.memory_space<vmem>>, vector<1x1xf32>
    %37 = vector.broadcast %36 : vector<1x1xf32> to vector<1x256xf32>
    %38 = arith.addf %35, %37 : vector<1x256xf32>
    %c0_29 = arith.constant 0 : index
    %c0_30 = arith.constant 0 : index
    %39 = vector.load %arg12[%c0_29, %c0_30] : memref<1x256xf32, #tpu.memory_space<vmem>>, vector<1x256xf32>
    tpu.vector_store %arg12[%c0_29, %c0_30], %38 {strides = array<i32>} : memref<1x256xf32, #tpu.memory_space<vmem>>, vector<1x256xf32>,
    return
  }
  func.func @transform_0(%arg0: i32) -> (i32, i32) {
    %c0_i32 = arith.constant 0 : i32
    %c0_i32_0 = arith.constant 0 : i32
    return %c0_i32, %arg0 : i32, i32
  }
  func.func @transform_1(%arg0: i32) -> (i32, i32) {
    %c0_i32 = arith.constant 0 : i32
    %c0_i32_0 = arith.constant 0 : i32
    %c0_i32_1 = arith.constant 0 : i32
    return %c0_i32, %c0_i32_0 : i32, i32
  }
  func.func @transform_2(%arg0: i32) -> (i32, i32) {
    %c0_i32 = arith.constant 0 : i32
    %c0_i32_0 = arith.constant 0 : i32
    %c0_i32_1 = arith.constant 0 : i32
    return %c0_i32, %c0_i32_0 : i32, i32
  }
  func.func @transform_3(%arg0: i32) -> (i32, i32) {
    %c0_i32 = arith.constant 0 : i32
    %c0_i32_0 = arith.constant 0 : i32
    %c0_i32_1 = arith.constant 0 : i32
    return %c0_i32, %c0_i32_0 : i32, i32
  }
  func.func @transform_4(%arg0: i32) -> (i32, i32) {
    %c0_i32 = arith.constant 0 : i32
    %c0_i32_0 = arith.constant 0 : i32
    %c0_i32_1 = arith.constant 0 : i32
    return %c0_i32, %c0_i32_0 : i32, i32
  }
  func.func @transform_5(%arg0: i32) -> (i32, i32) {
    %c0_i32 = arith.constant 0 : i32
    %c0_i32_0 = arith.constant 0 : i32
    %c0_i32_1 = arith.constant 0 : i32
    return %c0_i32, %c0_i32_0 : i32, i32
  }
  func.func @transform_6(%arg0: i32) -> (i32, i32) {
    %c0_i32 = arith.constant 0 : i32
    %c0_i32_0 = arith.constant 0 : i32
    %c0_i32_1 = arith.constant 0 : i32
    return %c0_i32, %c0_i32_0 : i32, i32
  }
  func.func @transform_7(%arg0: i32) -> (i32, i32) {
    %c0_i32 = arith.constant 0 : i32
    %c0_i32_0 = arith.constant 0 : i32
    %c0_i32_1 = arith.constant 0 : i32
    return %c0_i32, %c0_i32_0 : i32, i32
  }
  func.func @transform_8(%arg0: i32) -> (i32, i32) {
    %c0_i32 = arith.constant 0 : i32
    %c0_i32_0 = arith.constant 0 : i32
    %c0_i32_1 = arith.constant 0 : i32
    return %c0_i32, %c0_i32_0 : i32, i32
  }
  func.func @transform_9(%arg0: i32) -> (i32, i32) {
    %c0_i32 = arith.constant 0 : i32
    %c0_i32_0 = arith.constant 0 : i32
    %c0_i32_1 = arith.constant 0 : i32
    return %c0_i32, %c0_i32_0 : i32, i32
  }
  func.func @transform_10(%arg0: i32) -> (i32, i32) {
    %c0_i32 = arith.constant 0 : i32
    %c0_i32_0 = arith.constant 0 : i32
    %c0_i32_1 = arith.constant 0 : i32
    return %c0_i32, %c0_i32_0 : i32, i32
  }
  func.func @transform_11(%arg0: i32) -> (i32, i32) {
    %c0_i32 = arith.constant 0 : i32
    %c0_i32_0 = arith.constant 0 : i32
    return %c0_i32, %arg0 : i32, i32
  }
}

</mosaic_0001>

<bundles_post_ra>
// kernel: tpu_custom_call.1
= control target key start
LH: loop header
LB: loop body
LE: loop exit
PB: predicated region body
PF: predicated region fallthrough
CT: control target
= control target key end

     0   :  { %s1210_s0 = inlined_call_operand.vmem [shape: f32[45,256], index: 0, kind: input, shape index: {}]   ;;  %s1211_s1 = inlined_call_operand.vmem [shape: bf16[90,45], index: 1, kind: input, shape index: {}]   ;;  %s1212_s2 = inlined_call_operand.vmem [shape: f32[90,1], index: 2, kind: input, shape index: {}]   ;;  %s1213_s3 = inlined_call_operand.vmem [shape: bf16[60,90], index: 3, kind: input, shape index: {}]   ;;  %s1214_s4 = inlined_call_operand.vmem [shape: f32[60,1], index: 4, kind: input, shape index: {}]   ;;  %s1215_s5 = inlined_call_operand.vmem [shape: bf16[30,60], index: 5, kind: input, shape index: {}]   ;;  %s1216_s6 = inlined_call_operand.vmem [shape: f32[30,1], index: 6, kind: input, shape index: {}]   ;;  %s1217_s7 = inlined_call_operand.vmem [shape: bf16[30,30], index: 7, kind: input, shape index: {}]   ;;  %s1218_s8 = inlined_call_operand.vmem [shape: f32[30,1], index: 8, kind: input, shape index: {}]   ;;  %s1219_s9 = inlined_call_operand.vmem [shape: bf16[1,30], index: 9, kind: input, shape index: {}]   ;;  %s1220_s10 = inlined_call_operand.<no memory space> [shape: f32[1,1], index: 10, kind: input, shape index: {}]   ;;  %s1221_s11 = inlined_call_operand.hbm [shape: f32[1,256], index: 11, kind: output, shape index: {}]  }
   0x1   :  { %v16_v0 = vstv %s1220_s10 }
   0x2   :  { %17 = vst [vmem:[#allocation2] sm:$0x1] %v16_v0 }
   0x3   :  { %v43_v1 = vld [vmem:[%s1210_s0 + $0x8] sm:$0xff]  ;;  %v45_v2 = vld [vmem:[%s1210_s0 + $0x18] sm:$0xff]  ;;  %v42_v3 = vld [vmem:[%s1210_s0] sm:$0xff]  ;;  %vm193_vm0 = vcmask 1045504   ;;  %vm194_vm1 = vcmask 1046528   ;;  %v932_v8 = vmov 65535  }
   0x4   :  { %v55_v4 = vpack.c.bf16 %v45_v2, %v43_v1  ;;  %v44_v5 = vld [vmem:[%s1210_s0 + $0x10] sm:$0xff]  ;;  %v47_v6 = vld [vmem:[%s1210_s0 + $0x28] sm:$0xff]  ;;  %v49_v7 = vld [vmem:[%s1210_s0 + $0x38] sm:$0xff]  ;;  %v195_v9 = vsel %vm193_vm0, 4294967295, %v932_v8  ;;  %v933_v15 = vmov 0   ;;  %vm174_vm2 = vcmask 367616  }
   0x5   :  { %v54_v10 = vpack.c.bf16 %v44_v5, %v42_v3  ;;  %v57_v11 = vpack.c.bf16 %v49_v7, %v47_v6  ;;  %v46_v12 = vld [vmem:[%s1210_s0 + $0x20] sm:$0xff]  ;;  %v48_v13 = vld [vmem:[%s1210_s0 + $0x30] sm:$0xff]  ;;  %v51_v14 = vld [vmem:[%s1210_s0 + $0x48] sm:$0xff]  ;;  %235 = vmatprep.mubr.bf16.mxu0 %v933_v15  ;;  %892 = vset.pattern.permute.xlu0 %v933_v15  ;;  %v196_v17 = vsel %vm194_vm1, %v195_v9, 0 }
   0x6   :  { %203 = vmatprep.subr.bf16.mxu0 %v55_v4  ;;  %v53_v16 = vld [vmem:[%s1210_s0 + $0x58] sm:$0x1f]  ;;  %v50_v18 = vld [vmem:[%s1210_s0 + $0x40] sm:$0xff]  ;;  %v52_v19 = vld [vmem:[%s1210_s0 + $0x50] sm:$0x1f]  ;;  %893 = vset.pattern.permute.xlu1 %v933_v15  ;;  %v56_v20 = vpack.c.bf16 %v48_v13, %v46_v12 }
   0x7   :  { %204 = vmatpush1.bf16.msra.mxu0 %v54_v10  ;;  %v59_v21 = vpack.c.bf16 %v53_v16, %v51_v14  ;;  %v58_v22 = vpack.c.bf16 %v52_v19, %v50_v18  ;;  %460 = vmatprep.mubr.bf16.mxu1 %v933_v15  ;;  %v72_v25 = vld [vmem:[%s1212_s2] sm:$0xff]  ;;  %v74_v26 = vld [vmem:[%s1212_s2 + $0x10] sm:$0xff]  ;;  %v73_v28 = vld [vmem:[%s1212_s2 + $0x8] sm:$0xff] }
   0x8   :  { %205 = vmatprep.subr.bf16.mxu0 %v57_v11  ;;  %v894_v27 = vld [vmem:[%s1211_s1] sm:$0xff]   ;;  %86 = vperm.xlu0 %892, %v72_v25   ;;  %v75_v29 = vld [vmem:[%s1212_s2 + $0x18] sm:$0xff]  ;;  %v77_v31 = vld [vmem:[%s1212_s2 + $0x28] sm:$0xff] }
   0x9   :  { %v201_v23 = vand.u32 %v196_v17, %v59_v21  ;;  %v198_v24 = vand.u32 %v196_v17, %v58_v22  ;;  %96 = vperm.xlu1 %893, %v74_v26   ;;  %v76_v30 = vld [vmem:[%s1212_s2 + $0x20] sm:$0xff]  ;;  %v895_v32 = vld [vmem:[%s1211_s1 + $0x8] sm:$0xff]   ;;  %v78_v33 = vld [vmem:[%s1212_s2 + $0x30] sm:$0xff] }
   0xa   :  { %v79_v34 = vld [vmem:[%s1212_s2 + $0x38] sm:$0xff]  ;;  %v80_v35 = vld [vmem:[%s1212_s2 + $0x40] sm:$0xff]  ;;  %v81_v36 = vld [vmem:[%s1212_s2 + $0x48] sm:$0xff] }
   0xb   :  { %206 = vmatpush1.bf16.msra.mxu0 %v56_v20 }
   0xc   :  { %207 = vmatprep.subr.bf16.mxu0 %v201_v23  ;;  %91 = vperm.xlu0 %892, %v73_v28  }
   0xd   :  { %101 = vperm.xlu1 %893, %v75_v29  }
   0xf   :  { %208 = vmatpush1.bf16.msra.mxu0 %v198_v24 }
  0x10   :  { %106 = vperm.xlu0 %892, %v76_v30  }
  0x11   :  { %111 = vperm.xlu1 %893, %v77_v31  }
  0x12   :  { %861 = vmatmul.mubr.msk.bf16.vlgmr.msra.gmra.mrb[0].mxu0 %vm174_vm2, %v894_v27 }
  0x13   :  { %245 = vmatprep.mubr.bf16.mxu0 %v933_v15 }
  0x14   :  { %116 = vperm.xlu0 %892, %v78_v33  }
  0x15   :  { %121 = vperm.xlu1 %893, %v79_v34  }
  0x1a   :  { %862 = vmatmul.mubr.msk.bf16.gmra.mrb[4].mxu0 %vm174_vm2, %v895_v32 }
  0x1b   :  { %255 = vmatprep.mubr.bf16.mxu0 %v933_v15 }
  0x1c   :  { %18 = vsyncpa [#allocation4], 0  ;;  %v896_v37 = vld [vmem:[%s1211_s1 + $0x10] sm:$0xff]   ;;  %126 = vperm.xlu0 %892, %v80_v35   ;;  %131 = vperm.xlu1 %893, %v81_v36   ;;  %v83_v39 = vld [vmem:[%s1212_s2 + $0x58] sm:$0x3]  ;;  %vm421_vm3 = vcmask 1044480  }
  0x1d   :  { %v82_v38 = vld [vmem:[%s1212_s2 + $0x50] sm:$0xff]  ;;  %v340_v40 = vld [vmem:[%s1214_s4] sm:$0xff]  ;;  %v341_v41 = vld [vmem:[%s1214_s4 + $0x8] sm:$0xff]  ;;  %vm408_vm4 = vcmask 736256   ;;  %vm563_vm5 = vcmask 490496   ;;  %vm679_vm6 = vcmask 244736  }
  0x1e   :  { %v897_v42 = vld [vmem:[%s1211_s1 + $0x18] sm:$0xff]   ;;  %v342_v43 = vld [vmem:[%s1214_s4 + $0x10] sm:$0xff]  ;;  %v344_v45 = vld [vmem:[%s1214_s4 + $0x20] sm:$0xff]  ;;  %s935_s15 = smov [#allocation3]  }
  0x1f   :  { %v343_v44 = vld [vmem:[%s1214_s4 + $0x18] sm:$0xff]  ;;  %v345_v46 = vld [vmem:[%s1214_s4 + $0x28] sm:$0xff]  ;;  %v898_v47 = vld [vmem:[%s1211_s1 + $0x20] sm:$0xff]  }
  0x20   :  { %136 = vperm.xlu0 %892, %v82_v38   ;;  %141 = vperm.xlu1 %893, %v83_v39   ;;  %v346_v48 = vld [vmem:[%s1214_s4 + $0x30] sm:$0xff]  ;;  %v347_v49 = vld [vmem:[%s1214_s4 + $0x38] sm:$0xf]  ;;  %v529_v50 = vld [vmem:[%s1216_s6] sm:$0xff] }
  0x21   :  { %v530_v51 = vld [vmem:[%s1216_s6 + $0x8] sm:$0xff]  ;;  %v531_v53 = vld [vmem:[%s1216_s6 + $0x10] sm:$0xff]  ;;  %v532_v54 = vld [vmem:[%s1216_s6 + $0x18] sm:$0x3f] }
  0x22   :  { %863 = vmatmul.mubr.msk.bf16.gmra.mrb[8].mxu0 %vm174_vm2, %v896_v37  ;;  %v899_v52 = vld [vmem:[%s1211_s1 + $0x28] sm:$0x1f]   ;;  %v645_v55 = vld [vmem:[%s1218_s8] sm:$0xff]  ;;  %v647_v57 = vld [vmem:[%s1218_s8 + $0x10] sm:$0xff] }
  0x23   :  { %265 = vmatprep.mubr.bf16.mxu0 %v933_v15  ;;  %v646_v56 = vld [vmem:[%s1218_s8 + $0x8] sm:$0xff]  ;;  %v648_v58 = vld [vmem:[%s1218_s8 + $0x18] sm:$0x3f]  ;;  %v758_v59 = vld [vmem:[#allocation2] sm:$0x1] }
  0x24   :  { %350 = vperm.xlu0 %892, %v340_v40   ;;  %355 = vperm.xlu1 %893, %v341_v41  }
  0x28   :  { %360 = vperm.xlu0 %892, %v342_v43   ;;  %365 = vperm.xlu1 %893, %v343_v44  }
  0x2a   :  { %864 = vmatmul.mubr.msk.bf16.gmra.mrb[12].mxu0 %vm174_vm2, %v897_v42 }
  0x2b   :  { %275 = vmatprep.mubr.bf16.mxu0 %v933_v15 }
  0x2c   :  { %370 = vperm.xlu0 %892, %v344_v45   ;;  %375 = vperm.xlu1 %893, %v345_v46  }
  0x30   :  { %380 = vperm.xlu0 %892, %v346_v48   ;;  %385 = vperm.xlu1 %893, %v347_v49  }
  0x32   :  { %865 = vmatmul.mubr.msk.bf16.gmra.mrb[16].mxu0 %vm174_vm2, %v898_v47 }
  0x33   :  { %285 = vmatprep.mubr.bf16.mxu0 %v933_v15 }
  0x34   :  { %535 = vperm.xlu0 %892, %v529_v50   ;;  %540 = vperm.xlu1 %893, %v530_v51  }
  0x38   :  { %545 = vperm.xlu0 %892, %v531_v53   ;;  %550 = vperm.xlu1 %893, %v532_v54  }
  0x3a   :  { %866 = vmatmul.mubr.msk.bf16.gmra.mrb[20].mxu0 %vm174_vm2, %v899_v52 }
  0x3b   :  { %724 = vmatprep.mubr.bf16.mxu0 %v933_v15 }
  0x3c   :  { %651 = vperm.xlu0 %892, %v645_v55   ;;  %656 = vperm.xlu1 %893, %v646_v56  }
  0x40   :  { %661 = vperm.xlu0 %892, %v647_v57   ;;  %666 = vperm.xlu1 %893, %v648_v58  }
  0x44   :  { %761 = vperm.xlu0 %892, %v758_v59  }
  0x87   :  { %v87_v60 = vpop.permute.xlu0 %86 }
  0x88   :  { %v97_v5 = vpop.permute.xlu1 %96 }
  0x8b   :  { %v92_v0 = vpop.permute.xlu0 %91 }
  0x8c   :  { %v102_v17 = vpop.permute.xlu1 %101 }
  0x8f   :  { %v107_v28 = vpop.permute.xlu0 %106 }
  0x90   :  { %v112_v33 = vpop.permute.xlu1 %111 }
  0x93   :  { %v117_v44 = vpop.permute.xlu0 %116 }
  0x94   :  { %v122_v49 = vpop.permute.xlu1 %121 }
  0xe5   :  { %v237_v61 = vpop.f32.mrb[0].mxu0 }
  0xe6   :  { %v238_v62 = vadd.f32 %v237_v61, %v87_v60  ;;  %v239_v63 = vpop.f32.mrb[1].mxu0 }
  0xe7   :  { %v240_v1 = vadd.f32 %v239_v63, %v87_v60  ;;  %v241_v2 = vpop.f32.mrb[2].mxu0  ;;  %v127_v60 = vpop.permute.xlu0 %126 }
  0xe8   :  { %v242_v3 = vadd.f32 %v241_v2, %v92_v0  ;;  %v243_v4 = vpop.f32.mrb[3].mxu0  ;;  %v296_v7 = vmax.f32 %v238_v62, 0.0 }
  0xe9   :  { %v244_v6 = vadd.f32 %v243_v4, %v92_v0  ;;  %v297_v9 = vmax.f32 %v240_v1, 0.0  ;;  %v132_v1 = vpop.permute.xlu1 %131 }
  0xea   :  { %v298_v8 = vmax.f32 %v242_v3, 0.0 }
  0xeb   :  { %v299_v10 = vmax.f32 %v244_v6, 0.0 }
  0xec   :  { %v320_v11 = vpack.c.bf16 %v298_v8, %v296_v7 }
  0xed   :  { %v247_v12 = vpop.f32.mrb[4].mxu0  ;;  %v321_v13 = vpack.c.bf16 %v299_v10, %v297_v9 }
  0xee   :  { %v248_v14 = vadd.f32 %v247_v12, %v97_v5  ;;  %v249_v16 = vpop.f32.mrb[5].mxu0  ;;  %v137_v12 = vpop.permute.xlu0 %136 }
  0xef   :  { %v250_v18 = vadd.f32 %v249_v16, %v97_v5  ;;  %v251_v19 = vpop.f32.mrb[6].mxu0  ;;  %428 = vmatprep.subr.bf16.mxu1 %v321_v13 }
  0xf0   :  { %v252_v20 = vadd.f32 %v251_v19, %v102_v17  ;;  %v253_v21 = vpop.f32.mrb[7].mxu0  ;;  %429 = vmatpush1.bf16.msra.mxu1 %v320_v11  ;;  %v300_v23 = vmax.f32 %v248_v14, 0.0 }
  0xf1   :  { %v254_v22 = vadd.f32 %v253_v21, %v102_v17  ;;  %v301_v25 = vmax.f32 %v250_v18, 0.0  ;;  %v142_v18 = vpop.permute.xlu1 %141 }
  0xf2   :  { %v302_v24 = vmax.f32 %v252_v20, 0.0 }
  0xf3   :  { %v303_v26 = vmax.f32 %v254_v22, 0.0 }
  0xf4   :  { %v322_v27 = vpack.c.bf16 %v302_v24, %v300_v23 }
  0xf5   :  { %v323_v29 = vpack.c.bf16 %v303_v26, %v301_v25  ;;  %v257_v30 = vpop.f32.mrb[8].mxu0 }
  0xf6   :  { %v258_v31 = vadd.f32 %v257_v30, %v107_v28  ;;  %v259_v32 = vpop.f32.mrb[9].mxu0 }
  0xf7   :  { %v260_v34 = vadd.f32 %v259_v32, %v107_v28  ;;  %v261_v35 = vpop.f32.mrb[10].mxu0  ;;  %430 = vmatprep.subr.bf16.mxu1 %v323_v29  ;;  %v901_v32 = vld [vmem:[%s1213_s3 + $0x8] sm:$0xff]  }
  0xf8   :  { %v262_v36 = vadd.f32 %v261_v35, %v112_v33  ;;  %v263_v37 = vpop.f32.mrb[11].mxu0  ;;  %431 = vmatpush1.bf16.msra.mxu1 %v322_v27  ;;  %v304_v39 = vmax.f32 %v258_v31, 0.0  ;;  %v900_v31 = vld [vmem:[%s1213_s3] sm:$0xff]   ;;  %v351_v35 = vpop.permute.xlu0 %350 }
  0xf9   :  { %v264_v38 = vadd.f32 %v263_v37, %v112_v33  ;;  %v305_v41 = vmax.f32 %v260_v34, 0.0  ;;  %v902_v33 = vld [vmem:[%s1213_s3 + $0x10] sm:$0xff]   ;;  %v903_v34 = vld [vmem:[%s1213_s3 + $0x18] sm:$0x3f]  }
  0xfa   :  { %v306_v40 = vmax.f32 %v262_v36, 0.0 }
  0xfb   :  { %v307_v42 = vmax.f32 %v264_v38, 0.0 }
  0xfc   :  { %v324_v43 = vpack.c.bf16 %v306_v40, %v304_v39  ;;  %v356_v39 = vpop.permute.xlu1 %355 }
  0xfd   :  { %v325_v45 = vpack.c.bf16 %v307_v42, %v305_v41  ;;  %v267_v46 = vpop.f32.mrb[12].mxu0 }
  0xfe   :  { %v268_v47 = vadd.f32 %v267_v46, %v117_v44  ;;  %v269_v48 = vpop.f32.mrb[13].mxu0 }
  0xff   :  { %v270_v50 = vadd.f32 %v269_v48, %v117_v44  ;;  %v271_v51 = vpop.f32.mrb[14].mxu0  ;;  %432 = vmatprep.subr.bf16.mxu1 %v325_v45 }
 0x100   :  { %v272_v52 = vadd.f32 %v271_v51, %v122_v49  ;;  %v273_v53 = vpop.f32.mrb[15].mxu0  ;;  %433 = vmatpush1.bf16.msra.mxu1 %v324_v43  ;;  %v308_v55 = vmax.f32 %v268_v47, 0.0 }
 0x101   :  { %v274_v54 = vadd.f32 %v273_v53, %v122_v49  ;;  %v309_v57 = vmax.f32 %v270_v50, 0.0  ;;  %v361_v50 = vpop.permute.xlu0 %360 }
 0x102   :  { %v310_v56 = vmax.f32 %v272_v52, 0.0 }
 0x103   :  { %v311_v58 = vmax.f32 %v274_v54, 0.0 }
 0x104   :  { %v326_v59 = vpack.c.bf16 %v310_v56, %v308_v55  ;;  %v366_v55 = vpop.permute.xlu1 %365 }
 0x105   :  { %v327_v61 = vpack.c.bf16 %v311_v58, %v309_v57  ;;  %v277_v62 = vpop.f32.mrb[16].mxu0 }
 0x106   :  { %v278_v63 = vadd.f32 %v277_v62, %v127_v60  ;;  %v279_v0 = vpop.f32.mrb[17].mxu0 }
 0x107   :  { %v280_v2 = vadd.f32 %v279_v0, %v127_v60  ;;  %v281_v3 = vpop.f32.mrb[18].mxu0  ;;  %434 = vmatprep.subr.bf16.mxu1 %v327_v61 }
 0x108   :  { %v282_v4 = vadd.f32 %v281_v3, %v132_v1  ;;  %v283_v5 = vpop.f32.mrb[19].mxu0  ;;  %435 = vmatpush1.bf16.msra.mxu1 %v326_v59  ;;  %v312_v7 = vmax.f32 %v278_v63, 0.0 }
 0x109   :  { %v284_v6 = vadd.f32 %v283_v5, %v132_v1  ;;  %v313_v9 = vmax.f32 %v280_v2, 0.0  ;;  %v371_v2 = vpop.permute.xlu0 %370 }
 0x10a   :  { %v314_v8 = vmax.f32 %v282_v4, 0.0 }
 0x10b   :  { %v315_v10 = vmax.f32 %v284_v6, 0.0 }
 0x10c   :  { %v328_v11 = vpack.c.bf16 %v314_v8, %v312_v7  ;;  %v376_v7 = vpop.permute.xlu1 %375 }
 0x10d   :  { %v329_v13 = vpack.c.bf16 %v315_v10, %v313_v9  ;;  %v287_v14 = vpop.f32.mrb[20].mxu0 }
 0x10e   :  { %v288_v16 = vadd.f32 %v287_v14, %v137_v12  ;;  %v289_v17 = vpop.f32.mrb[21].mxu0 }
 0x10f   :  { %v290_v19 = vadd.f32 %v289_v17, %v137_v12  ;;  %v291_v20 = vpop.f32.mrb[22].mxu0  ;;  %436 = vmatprep.subr.bf16.mxu1 %v329_v13 }
 0x110   :  { %v292_v21 = vadd.f32 %v291_v20, %v142_v18  ;;  %v293_v22 = vpop.f32.mrb[23].mxu0  ;;  %437 = vmatpush1.bf16.msra.mxu1 %v328_v11  ;;  %v316_v24 = vmax.f32 %v288_v16, 0.0 }
 0x111   :  { %v294_v23 = vadd.f32 %v293_v22, %v142_v18  ;;  %v317_v26 = vmax.f32 %v290_v19, 0.0  ;;  %v381_v19 = vpop.permute.xlu0 %380 }
 0x112   :  { %v318_v25 = vmax.f32 %v292_v21, 0.0 }
 0x113   :  { %v319_v27 = vmax.f32 %v294_v23, 0.0 }
 0x114   :  { %v330_v28 = vpack.c.bf16 %v318_v25, %v316_v24  ;;  %v386_v24 = vpop.permute.xlu1 %385 }
 0x115   :  { %v331_v29 = vpack.c.bf16 %v319_v27, %v317_v26 }
 0x116   :  { %v423_v30 = vsel %vm421_vm3, %v330_v28, 0 }
 0x117   :  { %871 = vmatprep.subr.msk.bf16.mxu1 %vm421_vm3, %v331_v29 }
 0x118   :  { %439 = vmatpush1.bf16.msra.mxu1 %v423_v30 }
 0x11b   :  { %872 = vmatmul.mubr.msk.bf16.vlgmr.msra.gmra.mrb[0].mxu1 %vm408_vm4, %v900_v31 }
 0x11c   :  { %470 = vmatprep.mubr.bf16.mxu1 %v933_v15 }
 0x123   :  { %873 = vmatmul.mubr.msk.bf16.gmra.mrb[4].mxu1 %vm408_vm4, %v901_v32 }
 0x124   :  { %480 = vmatprep.mubr.bf16.mxu1 %v933_v15 }
 0x12b   :  { %874 = vmatmul.mubr.msk.bf16.gmra.mrb[8].mxu1 %vm408_vm4, %v902_v33 }
 0x12c   :  { %490 = vmatprep.mubr.bf16.mxu1 %v933_v15 }
 0x133   :  { %875 = vmatmul.mubr.msk.bf16.gmra.mrb[12].mxu1 %vm408_vm4, %v903_v34 }
 0x134   :  { %608 = vmatprep.mubr.bf16.mxu1 %v933_v15 }
 0x1ee   :  { %v462_v36 = vpop.f32.mrb[0].mxu1 }
 0x1ef   :  { %v463_v37 = vadd.f32 %v462_v36, %v351_v35  ;;  %v464_v38 = vpop.f32.mrb[1].mxu1 }
 0x1f0   :  { %v465_v40 = vadd.f32 %v464_v38, %v351_v35  ;;  %v466_v41 = vpop.f32.mrb[2].mxu1  ;;  %v905_v38 = vld [vmem:[%s1215_s5 + $0x8] sm:$0x7f]  }
 0x1f1   :  { %v467_v42 = vadd.f32 %v466_v41, %v356_v39  ;;  %v468_v43 = vpop.f32.mrb[3].mxu1  ;;  %v501_v45 = vmax.f32 %v463_v37, 0.0  ;;  %v904_v37 = vld [vmem:[%s1215_s5] sm:$0xff]  }
 0x1f2   :  { %v469_v44 = vadd.f32 %v468_v43, %v356_v39  ;;  %v502_v47 = vmax.f32 %v465_v40, 0.0  ;;  %v536_v39 = vpop.permute.xlu0 %535  ;;  %v541_v43 = vpop.permute.xlu1 %540 }
 0x1f3   :  { %v503_v46 = vmax.f32 %v467_v42, 0.0 }
 0x1f4   :  { %v504_v48 = vmax.f32 %v469_v44, 0.0 }
 0x1f5   :  { %v517_v49 = vpack.c.bf16 %v503_v46, %v501_v45 }
 0x1f6   :  { %v518_v51 = vpack.c.bf16 %v504_v48, %v502_v47  ;;  %v472_v52 = vpop.f32.mrb[4].mxu1 }
 0x1f7   :  { %v473_v53 = vadd.f32 %v472_v52, %v361_v50  ;;  %v474_v54 = vpop.f32.mrb[5].mxu1 }
 0x1f8   :  { %v475_v56 = vadd.f32 %v474_v54, %v361_v50  ;;  %v476_v57 = vpop.f32.mrb[6].mxu1  ;;  %576 = vmatprep.subr.bf16.mxu1 %v518_v51  ;;  %v546_v54 = vpop.permute.xlu0 %545 }
 0x1f9   :  { %v477_v58 = vadd.f32 %v476_v57, %v366_v55  ;;  %v478_v59 = vpop.f32.mrb[7].mxu1  ;;  %577 = vmatpush1.bf16.msra.mxu1 %v517_v49  ;;  %v505_v61 = vmax.f32 %v473_v53, 0.0 }
 0x1fa   :  { %v479_v60 = vadd.f32 %v478_v59, %v366_v55  ;;  %v506_v63 = vmax.f32 %v475_v56, 0.0  ;;  %v551_v59 = vpop.permute.xlu1 %550 }
 0x1fb   :  { %v507_v62 = vmax.f32 %v477_v58, 0.0 }
 0x1fc   :  { %v508_v0 = vmax.f32 %v479_v60, 0.0 }
 0x1fd   :  { %v519_v1 = vpack.c.bf16 %v507_v62, %v505_v61 }
 0x1fe   :  { %v520_v3 = vpack.c.bf16 %v508_v0, %v506_v63  ;;  %v482_v4 = vpop.f32.mrb[8].mxu1 }
 0x1ff   :  { %v483_v5 = vadd.f32 %v482_v4, %v371_v2  ;;  %v484_v6 = vpop.f32.mrb[9].mxu1 }
 0x200   :  { %v485_v8 = vadd.f32 %v484_v6, %v371_v2  ;;  %v486_v9 = vpop.f32.mrb[10].mxu1  ;;  %578 = vmatprep.subr.bf16.mxu1 %v520_v3 }
 0x201   :  { %v487_v10 = vadd.f32 %v486_v9, %v376_v7  ;;  %v488_v11 = vpop.f32.mrb[11].mxu1  ;;  %579 = vmatpush1.bf16.msra.mxu1 %v519_v1  ;;  %v509_v13 = vmax.f32 %v483_v5, 0.0  ;;  %v907_v9 = vld [vmem:[%s1217_s7 + $0x8] sm:$0x7f]  }
 0x202   :  { %v489_v12 = vadd.f32 %v488_v11, %v376_v7  ;;  %v510_v16 = vmax.f32 %v485_v8, 0.0  ;;  %v906_v8 = vld [vmem:[%s1217_s7] sm:$0xff]  }
 0x203   :  { %v511_v14 = vmax.f32 %v487_v10, 0.0  ;;  %v652_v10 = vpop.permute.xlu0 %651 }
 0x204   :  { %v512_v17 = vmax.f32 %v489_v12, 0.0 }
 0x205   :  { %v521_v18 = vpack.c.bf16 %v511_v14, %v509_v13  ;;  %v657_v14 = vpop.permute.xlu1 %656 }
 0x206   :  { %v522_v20 = vpack.c.bf16 %v512_v17, %v510_v16  ;;  %v492_v21 = vpop.f32.mrb[12].mxu1 }
 0x207   :  { %v493_v22 = vadd.f32 %v492_v21, %v381_v19  ;;  %v494_v23 = vpop.f32.mrb[13].mxu1 }
 0x208   :  { %v495_v25 = vadd.f32 %v494_v23, %v381_v19  ;;  %v496_v26 = vpop.f32.mrb[14].mxu1  ;;  %580 = vmatprep.subr.bf16.mxu1 %v522_v20 }
 0x209   :  { %v497_v27 = vadd.f32 %v496_v26, %v386_v24  ;;  %v498_v28 = vpop.f32.mrb[15].mxu1  ;;  %581 = vmatpush1.bf16.msra.mxu1 %v521_v18  ;;  %v513_v30 = vmax.f32 %v493_v22, 0.0 }
 0x20a   :  { %v499_v29 = vadd.f32 %v498_v28, %v386_v24  ;;  %v514_v32 = vmax.f32 %v495_v25, 0.0  ;;  %v662_v25 = vpop.permute.xlu0 %661 }
 0x20b   :  { %v515_v31 = vmax.f32 %v497_v27, 0.0 }
 0x20c   :  { %v516_v33 = vmax.f32 %v499_v29, 0.0 }
 0x20d   :  { %v523_v34 = vpack.c.bf16 %v515_v31, %v513_v30  ;;  %v667_v30 = vpop.permute.xlu1 %666 }
 0x20e   :  { %v524_v35 = vpack.c.bf16 %v516_v33, %v514_v32 }
 0x20f   :  { %v571_v36 = vsel %vm193_vm0, %v523_v34, 0 }
 0x210   :  { %878 = vmatprep.subr.msk.bf16.mxu1 %vm193_vm0, %v524_v35 }
 0x211   :  { %583 = vmatpush1.bf16.msra.mxu1 %v571_v36 }
 0x214   :  { %879 = vmatmul.mubr.msk.bf16.vlgmr.msra.gmra.mrb[16].mxu1 %vm563_vm5, %v904_v37 }
 0x215   :  { %618 = vmatprep.mubr.bf16.mxu1 %v933_v15 }
 0x21c   :  { %880 = vmatmul.mubr.msk.bf16.gmra.mrb[20].mxu1 %vm563_vm5, %v905_v38 }
 0x21d   :  { %809 = vmatprep.mubr.bf16.mxu1 %v933_v15 }
 0x2e7   :  { %v610_v40 = vpop.f32.mrb[16].mxu1 }
 0x2e8   :  { %v611_v41 = vadd.f32 %v610_v40, %v536_v39  ;;  %v612_v42 = vpop.f32.mrb[17].mxu1 }
 0x2e9   :  { %v613_v44 = vadd.f32 %v612_v42, %v536_v39  ;;  %v614_v45 = vpop.f32.mrb[18].mxu1 }
 0x2ea   :  { %v615_v46 = vadd.f32 %v614_v45, %v541_v43  ;;  %v616_v47 = vpop.f32.mrb[19].mxu1  ;;  %v629_v49 = vmax.f32 %v611_v41, 0.0 }
 0x2eb   :  { %v617_v48 = vadd.f32 %v616_v47, %v541_v43  ;;  %v630_v51 = vmax.f32 %v613_v44, 0.0  ;;  %v757_v43 = vld [vmem:[%s1219_s9] sm:$0x1]  ;;  %v764_v44 = vlaneseq  ;;  %s847_s9 = sshll.u32 %s935_s15, 4  ;;  %s848_s9 = int_to_ptr.vmem [resolvable:$true] %s847_s9 }
 0x2ec   :  { %v631_v50 = vmax.f32 %v615_v46, 0.0  ;;  %v934_v46 = vmov 1966171168   ;;  %s908_s16 = scalar_lea.vmem %s848_s9, 32  ;;  %p913_p1 = scmp.lt.s32.totalorder %s848_s9, %s848_s9 }
 0x2ed   :  { %v632_v52 = vmax.f32 %v617_v48, 0.0  ;;  %v765_v45 = vshrl.u32 %v764_v44, 7  ;;  %v822_v47 = vunpack.c.l.s4 %v934_v46  ;;  %vm838_vm7 = vcmp.lt.s32.totalorder %v764_v44, 256  ;;  %p909_p0 = scmp.ne.s32.totalorder %s848_s9, %s908_s16  ;;  %p914_p2 = scmp.lt.s32.totalorder %s908_s16, %s908_s16 }
 0x2ee   :  { %v637_v53 = vpack.c.bf16 %v631_v50, %v629_v49  ;;  %v762_v49 = vpop.permute.xlu0 %761 }
 0x2ef   :  { %v638_v55 = vpack.c.bf16 %v632_v52, %v630_v51  ;;  %v620_v56 = vpop.f32.mrb[20].mxu1  ;;  %v766_v48 = vsub.s32 0, %v765_v45  ;;  %v823_v50 = vunpack.c.0.s8 %v822_v47  ;;  %p915_p3 = por %p914_p2, %p913_p1 }
 0x2f0   :  { %v621_v57 = vadd.f32 %v620_v56, %v546_v54  ;;  %v622_v58 = vpop.f32.mrb[21].mxu1 }
 0x2f1   :  { %v623_v60 = vadd.f32 %v622_v58, %v546_v54  ;;  %v624_v61 = vpop.f32.mrb[22].mxu1  ;;  %692 = vmatprep.subr.bf16.mxu0 %v638_v55  ;;  %v767_v51 = vrot.slane %v762_v49, %v766_v48  ;;  %v826_v56 = vsub.s32 %v823_v50, %v765_v45  ;;  %p916_p4 = pnand %p915_p3, %p909_p0 }
 0x2f2   :  { %v625_v62 = vadd.f32 %v624_v61, %v551_v59  ;;  %v626_v63 = vpop.f32.mrb[23].mxu1  ;;  %693 = vmatpush1.bf16.msra.mxu0 %v637_v53  ;;  %v633_v1 = vmax.f32 %v621_v57, 0.0 }
 0x2f3   :  { %v627_v0 = vadd.f32 %v626_v63, %v551_v59  ;;  %v634_v3 = vmax.f32 %v623_v60, 0.0 }
 0x2f4   :  { %v635_v2 = vmax.f32 %v625_v62, 0.0 }
 0x2f5   :  { %v636_v4 = vmax.f32 %v627_v0, 0.0 }
 0x2f6   :  { %v639_v5 = vpack.c.bf16 %v635_v2, %v633_v1 }
 0x2f7   :  { %v640_v6 = vpack.c.bf16 %v636_v4, %v634_v3 }
 0x2f8   :  { %v687_v7 = vsel %vm194_vm1, %v639_v5, 0 }
 0x2f9   :  { %883 = vmatprep.subr.msk.bf16.mxu0 %vm194_vm1, %v640_v6 }
 0x2fa   :  { %695 = vmatpush1.bf16.msra.mxu0 %v687_v7 }
 0x2fd   :  { %884 = vmatmul.mubr.msk.bf16.vlgmr.msra.gmra.mrb[24].mxu0 %vm679_vm6, %v906_v8 }
 0x2fe   :  { %734 = vmatprep.mubr.bf16.mxu0 %v933_v15 }
 0x305   :  { %885 = vmatmul.mubr.msk.bf16.gmra.mrb[28].mxu0 %vm679_vm6, %v907_v9 }
 0x3d0   :  { %v726_v11 = vpop.f32.mrb[24].mxu0 }
 0x3d1   :  { %v727_v12 = vadd.f32 %v726_v11, %v652_v10  ;;  %v728_v13 = vpop.f32.mrb[25].mxu0 }
 0x3d2   :  { %v729_v16 = vadd.f32 %v728_v13, %v652_v10  ;;  %v730_v17 = vpop.f32.mrb[26].mxu0 }
 0x3d3   :  { %v731_v18 = vadd.f32 %v730_v17, %v657_v14  ;;  %v732_v19 = vpop.f32.mrb[27].mxu0  ;;  %v745_v21 = vmax.f32 %v727_v12, 0.0 }
 0x3d4   :  { %v733_v20 = vadd.f32 %v732_v19, %v657_v14  ;;  %v746_v23 = vmax.f32 %v729_v16, 0.0 }
 0x3d5   :  { %v747_v22 = vmax.f32 %v731_v18, 0.0 }
 0x3d6   :  { %v748_v15 = vmax.f32 %v733_v20, 0.0 }
 0x3d7   :  { %v753_v24 = vpack.c.bf16 %v747_v22, %v745_v21 }
 0x3d8   :  { %v754_v26 = vpack.c.bf16 %v748_v15, %v746_v23  ;;  %v736_v27 = vpop.f32.mrb[28].mxu0 }
 0x3d9   :  { %v737_v28 = vadd.f32 %v736_v27, %v662_v25  ;;  %v738_v29 = vpop.f32.mrb[29].mxu0 }
 0x3da   :  { %v739_v31 = vadd.f32 %v738_v29, %v662_v25  ;;  %v740_v32 = vpop.f32.mrb[30].mxu0  ;;  %777 = vmatprep.subr.bf16.mxu1 %v754_v26 }
 0x3db   :  { %v741_v33 = vadd.f32 %v740_v32, %v667_v30  ;;  %v742_v34 = vpop.f32.mrb[31].mxu0  ;;  %778 = vmatpush1.bf16.msra.mxu1 %v753_v24  ;;  %v749_v36 = vmax.f32 %v737_v28, 0.0 }
 0x3dc   :  { %v743_v35 = vadd.f32 %v742_v34, %v667_v30  ;;  %v750_v38 = vmax.f32 %v739_v31, 0.0 }
 0x3dd   :  { %v751_v37 = vmax.f32 %v741_v33, 0.0 }
 0x3de   :  { %v752_v39 = vmax.f32 %v743_v35, 0.0 }
 0x3df   :  { %v755_v40 = vpack.c.bf16 %v751_v37, %v749_v36 }
 0x3e0   :  { %v756_v41 = vpack.c.bf16 %v752_v39, %v750_v38 }
 0x3e1   :  { %v772_v42 = vsel %vm194_vm1, %v755_v40, 0 }
 0x3e2   :  { %886 = vmatprep.subr.msk.bf16.mxu1 %vm194_vm1, %v756_v41 }
 0x3e3   :  { %780 = vmatpush1.bf16.msra.mxu1 %v772_v42 }
 0x3e6   :  { %887 = vmatmul.mubr.msk.bf16.vlgmr.msra.gmra.mrb[24].mxu1 %vm679_vm6, %v757_v43 }
 0x4b9   :  { %v811_v52 = vpop.f32.mrb[24].mxu1 }
 0x4ba   :  { %v812_v53 = vadd.f32 %v811_v52, %v767_v51  ;;  %v813_v54 = vpop.f32.mrb[25].mxu1 }
 0x4bb   :  { %v814_v55 = vadd.f32 %v813_v54, %v767_v51  ;;  %v815_v57 = vpop.f32.mrb[26].mxu1 }
 0x4bc   :  { %v816_v58 = vpop.f32.mrb[27].mxu1 }
 0x4bd   :  { %v820_v59 = vcombine.low %v812_v53, %v814_v55 }
 0x4bf   :  { %v827_v60 = vrot.slane %v820_v59, %v826_v56 }
 0x4c1   :  { %v834_v61 = vrot.slane %v827_v60, %v826_v56 }
 0x4c3   :  { %840 = vst.msk [vmem:[#allocation3] sm:$0x3] %vm838_vm7, %v834_v61 }
 0x4c4   :  { %919 = shalt.err (!%p916_p4)
}
 0x4c5   :  { %s920_s18 = scalar_lea.hbm %s1221_s11, 32 }
 0x4c6   :  { %p921_p5 = scmp.ne.s32.totalorder %s1221_s11, %s920_s18  ;;  %p924_p6 = scmp.lt.u32.totalorder %s920_s18, %s1221_s11 }
 0x4c8   :  { %p926_p7 = pnand %p924_p6, %p921_p5 }
 0x4ca   :  { %929 = shalt.err (!%p926_p7)
}
 0x4cb   :  { %850 = dma.vmem_to_hbm [thread:$0]  %s848_s9, 32, %s1221_s11, [#allocation4]  }
 0x4cc   :  { %930 = dma.done.wait [#allocation4], 32  }
 0x4cd   :  { %931 = vsyncadd [#allocation4], 4294967264 }
 0x4ce   :  { %854 = vsyncpa [#allocation4], 1 }

</bundles_post_ra>
